<compile_context>
chip_gen: v7x
topology: tpu7x:2x2x1
jax: 0.10.0
libtpu: 0.0.40
codegen_flags: <defaults>
</compile_context>

<pallas_src>
import jax
import jax.numpy as jnp
from jax.experimental import pallas as pl
from jax.experimental.pallas import tpu as pltpu

IN_FEATURES = 32   # dataset_train.shape[1] (synthetic choice)
H1, H2, H3, OUT = 64, 32, 16, 1


def _round_up(n, m):
    return ((n + m - 1) // m) * m


def mlp_kernel(x_ref,
               w1_ref, b1_ref,
               w2_ref, b2_ref,
               w3_ref, b3_ref,
               w4t_ref, b4_ref,
               o_ref):
    x = x_ref[...]                                     # [TB, D]   f32

    # fc1 + relu   (dropout1 = identity at inference)
    h = jnp.dot(x, w1_ref[...], preferred_element_type=jnp.float32)
    h = jnp.maximum(h + b1_ref[...], 0.0)              # [TB, 64]  f32

    # fc2 + relu   (dropout2 = identity at inference)
    h = jnp.dot(h, w2_ref[...], preferred_element_type=jnp.float32)
    h = jnp.maximum(h + b2_ref[...], 0.0)              # [TB, 32]  f32

    # fc3 + relu   (dropout3 = identity at inference)
    h = jnp.dot(h, w3_ref[...], preferred_element_type=jnp.float32)
    h = jnp.maximum(h + b3_ref[...], 0.0)              # [TB, 16]  f32

    # fc4 + sigmoid, written transposed so the stored row is lane-dense:
    #   logits[0, b] = sum_k w4t[0, k] * h[b, k]
    logits = jax.lax.dot_general(
        w4t_ref[...], h,
        dimension_numbers=(((1,), (1,)), ((), ())),
        preferred_element_type=jnp.float32)             # [1, TB]  f32
    o_ref[0] = jax.nn.sigmoid(logits + b4_ref[...])     # b4 (1,1) broadcasts


def mymodel_forward(x, params, tile_b=None):
    """x: [B, IN_FEATURES] f32; params: dict of (w, b) per layer -> [B, 1] f32."""
    B, D = x.shape
    (w1, b1), (w2, b2), (w3, b3), (w4, b4) = (
        params["fc1"], params["fc2"], params["fc3"], params["fc4"]
    )

    # Batch tile: multiple of 128 (lane-dense output rows), capped at 1024.
    if tile_b is None:
        tile_b = min(1024, _round_up(max(B, 1), 128))
    b_pad = _round_up(B, tile_b)
    num_tiles = b_pad // tile_b

    # Pad only when the batch is ragged; otherwise x is streamed untouched.
    x_p = x if b_pad == B else jnp.pad(x, ((0, b_pad - B), (0, 0)))

    w4t = w4.T.astype(jnp.float32)                      # [1, H3]

    def const(a):
        # Full-array block, fetched once (constant index_map) -> stays resident.
        n = a.ndim
        return pl.BlockSpec(a.shape, lambda i: (0,) * n)

    out = pl.pallas_call(
        mlp_kernel,
        out_shape=jax.ShapeDtypeStruct((num_tiles, 1, tile_b), jnp.float32),
        grid=(num_tiles,),
        in_specs=[
            pl.BlockSpec((tile_b, D), lambda i: (i, 0)),   # x tile, pipelined
            const(w1), const(b1),
            const(w2), const(b2),
            const(w3), const(b3),
            const(w4t), const(b4),
        ],
        out_specs=pl.BlockSpec((1, 1, tile_b), lambda i: (i, 0, 0)),
        compiler_params=pltpu.CompilerParams(
            dimension_semantics=("parallel",)),   # shard grid across TCs (v7x)
    )(x_p, w1, b1, w2, b2, w3, b3, w4t, b4)

    return out.reshape(-1)[:B].reshape(B, OUT)


def init_params(key):
    """Deterministic PyTorch-style init, stored as [in, out] (x @ W + b)."""
    def linear(key, fan_in, fan_out):
        kw, kb = jax.random.split(key)
        bound = 1.0 / jnp.sqrt(fan_in)
        w = jax.random.uniform(kw, (fan_in, fan_out), jnp.float32, -bound, bound)
        b = jax.random.uniform(kb, (1, fan_out), jnp.float32, -bound, bound)
        return w, b

    k1, k2, k3, k4 = jax.random.split(key, 4)
    return {
        "fc1": linear(k1, IN_FEATURES, H1),
        "fc2": linear(k2, H1, H2),
        "fc3": linear(k3, H2, H3),
        "fc4": linear(k4, H3, OUT),
    }


def reference_forward(x, params):
    """Plain-JAX f32 reference for correctness checking."""
    h = x
    for name in ("fc1", "fc2", "fc3"):
        w, b = params[name]
        h = jnp.maximum(h @ w + b, 0.0)
    w, b = params["fc4"]
    return jax.nn.sigmoid(h @ w + b)


if __name__ == "__main__":
    key = jax.random.PRNGKey(0)
    kx, kp = jax.random.split(key)

    batch = 8
    x = jax.random.normal(kx, (batch, IN_FEATURES), jnp.float32)
    params = init_params(kp)

    out = mymodel_forward(x, params)
    out = jax.block_until_ready(out)

    ref = reference_forward(x, params)
    assert out.shape == (batch, OUT), out.shape
    # f32 end-to-end; small tolerance covers TPU MXU default-precision matmuls.
    assert jnp.allclose(out, ref, atol=1e-2, rtol=1e-2), (
        "mismatch vs reference, max abs diff = "
        f"{float(jnp.max(jnp.abs(out - ref)))}")

    print("KERNEL_OK")
</pallas_src>

<mosaic_0001>
module attributes {stable_mosaic.version = 11 : i64} {
  func.func @mlp_kernel(%arg0: i32, %arg1: memref<128x32xf32, #tpu.memory_space<vmem>>, %arg2: memref<32x64xf32, #tpu.memory_space<vmem>>, %arg3: memref<1x64xf32, #tpu.memory_space<vmem>>, %arg4: memref<64x32xf32, #tpu.memory_space<vmem>>, %arg5: memref<1x32xf32, #tpu.memory_space<vmem>>, %arg6: memref<32x16xf32, #tpu.memory_space<vmem>>, %arg7: memref<1x16xf32, #tpu.memory_space<vmem>>, %arg8: memref<1x16xf32, #tpu.memory_space<vmem>>, %arg9: memref<1x1xf32, #tpu.memory_space<vmem>>, %arg10: memref<1x1x128xf32, #tpu.memory_space<vmem>>) attributes {dimension_semantics = [#tpu.dimension_semantics<parallel>], iteration_bounds = array<i64: 1>, scalar_prefetch = 0 : i64, scratch_operands = 0 : i64, tpu.core_type = #tpu.core_type<tc>, window_params = [{transform_indices = @transform_0, window_bounds = array<i64: 128, 32>}, {pipeline_mode = #tpu.pipeline_mode<synchronous>, transform_indices = @transform_1, window_bounds = array<i64: 32, 64>}, {pipeline_mode = #tpu.pipeline_mode<synchronous>, transform_indices = @transform_2, window_bounds = array<i64: 1, 64>}, {pipeline_mode = #tpu.pipeline_mode<synchronous>, transform_indices = @transform_3, window_bounds = array<i64: 64, 32>}, {pipeline_mode = #tpu.pipeline_mode<synchronous>, transform_indices = @transform_4, window_bounds = array<i64: 1, 32>}, {pipeline_mode = #tpu.pipeline_mode<synchronous>, transform_indices = @transform_5, window_bounds = array<i64: 32, 16>}, {pipeline_mode = #tpu.pipeline_mode<synchronous>, transform_indices = @transform_6, window_bounds = array<i64: 1, 16>}, {pipeline_mode = #tpu.pipeline_mode<synchronous>, transform_indices = @transform_7, window_bounds = array<i64: 1, 16>}, {pipeline_mode = #tpu.pipeline_mode<synchronous>, transform_indices = @transform_8, window_bounds = array<i64: 1, 1>}, {transform_indices = @transform_9, window_bounds = array<i64: 1, 1, 128>}]} {
    %c0 = arith.constant 0 : index
    %c0_0 = arith.constant 0 : index
    %0 = vector.load %arg1[%c0, %c0_0] : memref<128x32xf32, #tpu.memory_space<vmem>>, vector<128x32xf32>
    %c0_1 = arith.constant 0 : index
    %c0_2 = arith.constant 0 : index
    %1 = vector.load %arg2[%c0_1, %c0_2] : memref<32x64xf32, #tpu.memory_space<vmem>>, vector<32x64xf32>
    %cst = arith.constant dense<0.000000e+00> : vector<128x64xf32>
    %2 = tpu.matmul %0, %1, %cst {dimension_numbers = #tpu.dot_dimension_numbers<[1], [0], [0], [1], [0, 0, 1, 1], [], []>} : vector<128x32xf32>, vector<32x64xf32>, vector<128x64xf32> -> vector<128x64xf32>
    %c0_3 = arith.constant 0 : index
    %c0_4 = arith.constant 0 : index
    %3 = vector.load %arg3[%c0_3, %c0_4] : memref<1x64xf32, #tpu.memory_space<vmem>>, vector<1x64xf32>
    %4 = vector.broadcast %3 : vector<1x64xf32> to vector<128x64xf32>
    %5 = arith.addf %2, %4 : vector<128x64xf32>
    %cst_5 = arith.constant 0.000000e+00 : f32
    %6 = vector.broadcast %cst_5 : f32 to vector<128x64xf32>
    %7 = arith.maximumf %5, %6 : vector<128x64xf32>
    %c0_6 = arith.constant 0 : index
    %c0_7 = arith.constant 0 : index
    %8 = vector.load %arg4[%c0_6, %c0_7] : memref<64x32xf32, #tpu.memory_space<vmem>>, vector<64x32xf32>
    %cst_8 = arith.constant dense<0.000000e+00> : vector<128x32xf32>
    %9 = tpu.matmul %7, %8, %cst_8 {dimension_numbers = #tpu.dot_dimension_numbers<[1], [0], [0], [1], [0, 0, 1, 1], [], []>} : vector<128x64xf32>, vector<64x32xf32>, vector<128x32xf32> -> vector<128x32xf32>
    %c0_9 = arith.constant 0 : index
    %c0_10 = arith.constant 0 : index
    %10 = vector.load %arg5[%c0_9, %c0_10] : memref<1x32xf32, #tpu.memory_space<vmem>>, vector<1x32xf32>
    %11 = vector.broadcast %10 : vector<1x32xf32> to vector<128x32xf32>
    %12 = arith.addf %9, %11 : vector<128x32xf32>
    %cst_11 = arith.constant 0.000000e+00 : f32
    %13 = vector.broadcast %cst_11 : f32 to vector<128x32xf32>
    %14 = arith.maximumf %12, %13 : vector<128x32xf32>
    %c0_12 = arith.constant 0 : index
    %c0_13 = arith.constant 0 : index
    %15 = vector.load %arg6[%c0_12, %c0_13] : memref<32x16xf32, #tpu.memory_space<vmem>>, vector<32x16xf32>
    %cst_14 = arith.constant dense<0.000000e+00> : vector<128x16xf32>
    %16 = tpu.matmul %14, %15, %cst_14 {dimension_numbers = #tpu.dot_dimension_numbers<[1], [0], [0], [1], [0, 0, 1, 1], [], []>} : vector<128x32xf32>, vector<32x16xf32>, vector<128x16xf32> -> vector<128x16xf32>
    %c0_15 = arith.constant 0 : index
    %c0_16 = arith.constant 0 : index
    %17 = vector.load %arg7[%c0_15, %c0_16] : memref<1x16xf32, #tpu.memory_space<vmem>>, vector<1x16xf32>
    %18 = vector.broadcast %17 : vector<1x16xf32> to vector<128x16xf32>
    %19 = arith.addf %16, %18 : vector<128x16xf32>
    %cst_17 = arith.constant 0.000000e+00 : f32
    %20 = vector.broadcast %cst_17 : f32 to vector<128x16xf32>
    %21 = arith.maximumf %19, %20 : vector<128x16xf32>
    %c0_18 = arith.constant 0 : index
    %c0_19 = arith.constant 0 : index
    %22 = vector.load %arg8[%c0_18, %c0_19] : memref<1x16xf32, #tpu.memory_space<vmem>>, vector<1x16xf32>
    %cst_20 = arith.constant dense<0.000000e+00> : vector<1x128xf32>
    %23 = tpu.matmul %22, %21, %cst_20 {dimension_numbers = #tpu.dot_dimension_numbers<[1], [1], [0], [0], [0, 0, 1, 0], [], []>} : vector<1x16xf32>, vector<128x16xf32>, vector<1x128xf32> -> vector<1x128xf32>
    %c0_21 = arith.constant 0 : index
    %c0_22 = arith.constant 0 : index
    %24 = vector.load %arg9[%c0_21, %c0_22] : memref<1x1xf32, #tpu.memory_space<vmem>>, vector<1x1xf32>
    %25 = vector.broadcast %24 : vector<1x1xf32> to vector<1x128xf32>
    %26 = arith.addf %23, %25 : vector<1x128xf32>
    %27 = arith.negf %26 : vector<1x128xf32>
    %28 = math.exp %27 : vector<1x128xf32>
    %cst_23 = arith.constant 1.000000e+00 : f32
    %29 = vector.broadcast %cst_23 : f32 to vector<1x128xf32>
    %30 = arith.addf %29, %28 : vector<1x128xf32>
    %31 = arith.divf %29, %30 : vector<1x128xf32>
    %c0_24 = arith.constant 0 : index
    %c0_25 = arith.constant 0 : index
    %c0_26 = arith.constant 0 : index
    %32 = vector.load %arg10[%c0_24, %c0_25, %c0_26] : memref<1x1x128xf32, #tpu.memory_space<vmem>>, vector<1x1x128xf32>
    %33 = vector.shape_cast %32 : vector<1x1x128xf32> to vector<1x128xf32>
    %34 = vector.shape_cast %31 : vector<1x128xf32> to vector<1x1x128xf32>
    tpu.vector_store %arg10[%c0_24, %c0_25, %c0_26], %34 {strides = array<i32>} : memref<1x1x128xf32, #tpu.memory_space<vmem>>, vector<1x1x128xf32>,
    return
  }
  func.func @transform_0(%arg0: i32) -> (i32, i32) {
    %c0_i32 = arith.constant 0 : i32
    %c0_i32_0 = arith.constant 0 : i32
    return %arg0, %c0_i32 : i32, i32
  }
  func.func @transform_1(%arg0: i32) -> (i32, i32) {
    %c0_i32 = arith.constant 0 : i32
    %c0_i32_0 = arith.constant 0 : i32
    %c0_i32_1 = arith.constant 0 : i32
    return %c0_i32, %c0_i32_0 : i32, i32
  }
  func.func @transform_2(%arg0: i32) -> (i32, i32) {
    %c0_i32 = arith.constant 0 : i32
    %c0_i32_0 = arith.constant 0 : i32
    %c0_i32_1 = arith.constant 0 : i32
    return %c0_i32, %c0_i32_0 : i32, i32
  }
  func.func @transform_3(%arg0: i32) -> (i32, i32) {
    %c0_i32 = arith.constant 0 : i32
    %c0_i32_0 = arith.constant 0 : i32
    %c0_i32_1 = arith.constant 0 : i32
    return %c0_i32, %c0_i32_0 : i32, i32
  }
  func.func @transform_4(%arg0: i32) -> (i32, i32) {
    %c0_i32 = arith.constant 0 : i32
    %c0_i32_0 = arith.constant 0 : i32
    %c0_i32_1 = arith.constant 0 : i32
    return %c0_i32, %c0_i32_0 : i32, i32
  }
  func.func @transform_5(%arg0: i32) -> (i32, i32) {
    %c0_i32 = arith.constant 0 : i32
    %c0_i32_0 = arith.constant 0 : i32
    %c0_i32_1 = arith.constant 0 : i32
    return %c0_i32, %c0_i32_0 : i32, i32
  }
  func.func @transform_6(%arg0: i32) -> (i32, i32) {
    %c0_i32 = arith.constant 0 : i32
    %c0_i32_0 = arith.constant 0 : i32
    %c0_i32_1 = arith.constant 0 : i32
    return %c0_i32, %c0_i32_0 : i32, i32
  }
  func.func @transform_7(%arg0: i32) -> (i32, i32) {
    %c0_i32 = arith.constant 0 : i32
    %c0_i32_0 = arith.constant 0 : i32
    %c0_i32_1 = arith.constant 0 : i32
    return %c0_i32, %c0_i32_0 : i32, i32
  }
  func.func @transform_8(%arg0: i32) -> (i32, i32) {
    %c0_i32 = arith.constant 0 : i32
    %c0_i32_0 = arith.constant 0 : i32
    %c0_i32_1 = arith.constant 0 : i32
    return %c0_i32, %c0_i32_0 : i32, i32
  }
  func.func @transform_9(%arg0: i32) -> (i32, i32, i32) {
    %c0_i32 = arith.constant 0 : i32
    %c0_i32_0 = arith.constant 0 : i32
    %c0_i32_1 = arith.constant 0 : i32
    return %arg0, %c0_i32, %c0_i32_0 : i32, i32, i32
  }
}

</mosaic_0001>

<bundles_post_ra>
// kernel: tpu_custom_call.1
= control target key start
LH: loop header
LB: loop body
LE: loop exit
PB: predicated region body
PF: predicated region fallthrough
CT: control target
= control target key end

     0   :  { %s1515_s0 = inlined_call_operand.vmem [shape: f32[128,32], index: 0, kind: input, shape index: {}]   ;;  %s1516_s1 = inlined_call_operand.vmem [shape: f32[32,64], index: 1, kind: input, shape index: {}]   ;;  %s1517_s2 = inlined_call_operand.vmem [shape: f32[1,64], index: 2, kind: input, shape index: {}]   ;;  %s1518_s3 = inlined_call_operand.vmem [shape: f32[64,32], index: 3, kind: input, shape index: {}]   ;;  %s1519_s4 = inlined_call_operand.vmem [shape: f32[1,32], index: 4, kind: input, shape index: {}]   ;;  %s1520_s5 = inlined_call_operand.vmem [shape: f32[32,16], index: 5, kind: input, shape index: {}]   ;;  %s1521_s6 = inlined_call_operand.vmem [shape: f32[1,16], index: 6, kind: input, shape index: {}]   ;;  %s1522_s7 = inlined_call_operand.vmem [shape: f32[1,16], index: 7, kind: input, shape index: {}]   ;;  %s1523_s8 = inlined_call_operand.<no memory space> [shape: f32[1,1], index: 8, kind: input, shape index: {}]   ;;  %s1524_s9 = inlined_call_operand.hbm [shape: f32[1,1,128], index: 9, kind: output, shape index: {}]  }
   0x1   :  { %v14_v0 = vstv %s1523_s8 }
   0x2   :  { %15 = vst [vmem:[#allocation2] sm:$0x1] %v14_v0 }
   0x3   :  { %v51_v1 = vld [vmem:[%s1516_s1] sm:$0xff]  ;;  %v52_v2 = vld [vmem:[%s1516_s1 + $0x8] sm:$0xff]  ;;  %v53_v3 = vld [vmem:[%s1516_s1 + $0x10] sm:$0xff]  ;;  %vm62_vm0 = vcmask 261120  }
   0x4   :  { %v1160_v4 = vpack.c.bf16 %v52_v2, %v51_v1  ;;  %v54_v5 = vld [vmem:[%s1516_s1 + $0x18] sm:$0xff]  ;;  %v35_v6 = vld [vmem:[%s1515_s0] sm:$0xff]  ;;  %v273_v9 = vld [vmem:[%s1518_s3 + $0x8] sm:$0xff] }
   0x5   :  { %v1164_v7 = vpack.c.bf16 %v54_v5, %v53_v3  ;;  %1029 = vmatprep.mubr.msk.f32.mxu0 %vm62_vm0, %v35_v6  ;;  %v272_v8 = vld [vmem:[%s1518_s3] sm:$0xff]  ;;  %v274_v10 = vld [vmem:[%s1518_s3 + $0x10] sm:$0xff]  ;;  %v275_v11 = vld [vmem:[%s1518_s3 + $0x18] sm:$0xff] }
   0x6   :  { %1161 = vmatprep.subr.bf16.mxu0 %v1160_v4  ;;  %v36_v12 = vld [vmem:[%s1515_s0 + $0x8] sm:$0xff]  ;;  %v1168_v13 = vpack.c.bf16 %v273_v9, %v272_v8  ;;  %v1172_v14 = vpack.c.bf16 %v275_v11, %v274_v10 }
   0x7   :  { %1163 = vmatpush3.bf16.msra.mxu0 %v1160_v4 }
   0x8   :  { %1165 = vmatprep.subr.bf16.mxu0 %v1164_v7 }
   0xb   :  { %1167 = vmatpush3.bf16.msra.mxu0 %v1164_v7 }
   0xc   :  { %16 = vsyncpa [#allocation4], 0  ;;  %v37_v15 = vld [vmem:[%s1515_s0 + $0x10] sm:$0xff]  ;;  %v276_v16 = vld [vmem:[%s1518_s3 + $0x20] sm:$0xff]  ;;  %1169 = vmatprep.subr.bf16.mxu1 %v1168_v13  ;;  %vm287_vm1 = vcmask 523264   ;;  %vm1259_vm2 = vmmov 0  }
   0xd   :  { %v277_v17 = vld [vmem:[%s1518_s3 + $0x28] sm:$0xff]  ;;  %1171 = vmatpush3.bf16.msra.mxu1 %v1168_v13  ;;  %v38_v18 = vld [vmem:[%s1515_s0 + $0x18] sm:$0xff]  ;;  %v39_v20 = vld [vmem:[%s1515_s0 + $0x20] sm:$0xff]  ;;  %vm728_vm3 = vcmask 130048   ;;  %s1262_s29 = smov [#allocation3]  }
   0xe   :  { %1030 = vmatmul.mubr.msk.f32.vlgmr.msra.gmra.mrb[0].mxu0 %vm62_vm0, %v36_v12  ;;  %1173 = vmatprep.subr.bf16.mxu1 %v1172_v14  ;;  %v1176_v19 = vpack.c.bf16 %v277_v17, %v276_v16  ;;  %v40_v21 = vld [vmem:[%s1515_s0 + $0x28] sm:$0xff]  ;;  %v41_v22 = vld [vmem:[%s1515_s0 + $0x30] sm:$0xff]  ;;  %v42_v23 = vld [vmem:[%s1515_s0 + $0x38] sm:$0xff]  ;;  %s863_s30 = sshll.u32 %s1262_s29, 4  ;;  %s864_s30 = int_to_ptr.vmem [resolvable:$true] %s863_s30 }
   0xf   :  { %1032 = vmatprep.mubr.msk.f32.mxu0 %vm62_vm0, %v37_v15  ;;  %v43_v24 = vld [vmem:[%s1515_s0 + $0x40] sm:$0xff]  ;;  %v44_v25 = vld [vmem:[%s1515_s0 + $0x48] sm:$0xff]  ;;  %v45_v26 = vld [vmem:[%s1515_s0 + $0x50] sm:$0xff]  ;;  %s1238_s10 = scalar_lea.vmem %s864_s30, 32  ;;  %p1239_p1 = scmp.lt.s32.totalorder %s864_s30, %s864_s30 }
  0x10   :  { %v46_v27 = vld [vmem:[%s1515_s0 + $0x58] sm:$0xff]  ;;  %v47_v28 = vld [vmem:[%s1515_s0 + $0x60] sm:$0xff]  ;;  %v48_v29 = vld [vmem:[%s1515_s0 + $0x68] sm:$0xff] }
  0x11   :  { %1175 = vmatpush3.bf16.msra.mxu1 %v1172_v14  ;;  %v49_v30 = vld [vmem:[%s1515_s0 + $0x70] sm:$0xff]  ;;  %v50_v31 = vld [vmem:[%s1515_s0 + $0x78] sm:$0xff]  ;;  %v497_v35 = vld [vmem:[%s1520_s5] sm:$0xff] }
  0x12   :  { %1033 = vmatmul.mubr.msk.f32.gmra.mrb[2].mxu0 %vm62_vm0, %v38_v18  ;;  %1177 = vmatprep.subr.bf16.mxu1 %v1176_v19  ;;  %v278_v32 = vld [vmem:[%s1518_s3 + $0x30] sm:$0xff]  ;;  %v279_v33 = vld [vmem:[%s1518_s3 + $0x38] sm:$0xff]  ;;  %v498_v36 = vld [vmem:[%s1520_s5 + $0x8] sm:$0xff] }
  0x13   :  { %1035 = vmatprep.mubr.msk.f32.mxu0 %vm62_vm0, %v39_v20  ;;  %v1180_v34 = vpack.c.bf16 %v279_v33, %v278_v32  ;;  %v499_v37 = vld [vmem:[%s1520_s5 + $0x10] sm:$0xff]  ;;  %v1184_v38 = vpack.c.bf16 %v498_v36, %v497_v35  ;;  %v500_v39 = vld [vmem:[%s1520_s5 + $0x18] sm:$0xff]  ;;  %v871_v41 = vld [vmem:[%s1517_s2] ss:$0 sm:$0xff] }
  0x14   :  { %v1188_v40 = vpack.c.bf16 %v500_v39, %v499_v37  ;;  %vm1472_vm4 = vmpackc.low %vm728_vm3, %vm728_vm3 }
  0x15   :  { %1179 = vmatpush3.bf16.msra.mxu1 %v1176_v19  ;;  %1185 = vmatprep.subr.bf16.mxu0 %v1184_v38 }
  0x16   :  { %1036 = vmatmul.mubr.msk.f32.gmra.mrb[4].mxu0 %vm62_vm0, %v40_v21  ;;  %1181 = vmatprep.subr.bf16.mxu1 %v1180_v34 }
  0x17   :  { %1038 = vmatprep.mubr.msk.f32.mxu0 %vm62_vm0, %v41_v22  ;;  %1187 = vmatpush3.bf16.msra.mxu0 %v1184_v38 }
  0x18   :  { %1189 = vmatprep.subr.bf16.mxu0 %v1188_v40 }
  0x19   :  { %1183 = vmatpush3.bf16.msra.mxu1 %v1180_v34 }
  0x1a   :  { %1039 = vmatmul.mubr.msk.f32.gmra.mrb[6].mxu0 %vm62_vm0, %v42_v23 }
  0x1b   :  { %1041 = vmatprep.mubr.msk.f32.mxu0 %vm62_vm0, %v43_v24  ;;  %1191 = vmatpush3.bf16.msra.mxu0 %v1188_v40 }
  0x1e   :  { %1042 = vmatmul.mubr.msk.f32.gmra.mrb[8].mxu0 %vm62_vm0, %v44_v25 }
  0x1f   :  { %1044 = vmatprep.mubr.msk.f32.mxu0 %vm62_vm0, %v45_v26  ;;  %v888_v26 = vld [vmem:[%s1519_s4] ss:$0 sm:$0xff] }
  0x22   :  { %1045 = vmatmul.mubr.msk.f32.gmra.mrb[10].mxu0 %vm62_vm0, %v46_v27 }
  0x23   :  { %1047 = vmatprep.mubr.msk.f32.mxu0 %vm62_vm0, %v47_v28 }
  0x26   :  { %1048 = vmatmul.mubr.msk.f32.gmra.mrb[12].mxu0 %vm62_vm0, %v48_v29 }
  0x27   :  { %1050 = vmatprep.mubr.msk.f32.mxu0 %vm62_vm0, %v49_v30 }
  0x2a   :  { %1051 = vmatmul.mubr.msk.f32.gmra.mrb[14].mxu0 %vm62_vm0, %v50_v31 }
  0xe1   :  { %v1031_v42 = vpop.f32.mrb[0].mxu0 }
  0xe2   :  { %v183_v43 = vadd.f32 %v1031_v42, %v871_v41  ;;  %v177_v44 = vpop.f32.mrb[1].mxu0 }
  0xe3   :  { %v178_v45 = vadd.f32 %v871_v41, %v177_v44 }
  0xe4   :  { %v257_v48 = vmax.f32 %v183_v43, 0.0 }
  0xe5   :  { %v256_v46 = vmax.f32 %v178_v45, 0.0  ;;  %v1034_v47 = vpop.f32.mrb[2].mxu0 }
  0xe6   :  { %v193_v49 = vadd.f32 %v1034_v47, %v871_v41  ;;  %v187_v50 = vpop.f32.mrb[3].mxu0 }
  0xe7   :  { %v188_v51 = vadd.f32 %v871_v41, %v187_v50  ;;  %1069 = vmatprep.mubr.msk.f32.mxu1 %vm287_vm1, %v256_v46 }
  0xe8   :  { %v259_v52 = vmax.f32 %v193_v49, 0.0  ;;  %1070 = vmatmul.mubr.msk.f32.vlgmr.msra.gmra.mrb[0].mxu1 %vm287_vm1, %v257_v48 }
  0xe9   :  { %v258_v53 = vmax.f32 %v188_v51, 0.0  ;;  %v1037_v54 = vpop.f32.mrb[4].mxu0 }
  0xea   :  { %v203_v55 = vadd.f32 %v1037_v54, %v871_v41  ;;  %v197_v56 = vpop.f32.mrb[5].mxu0 }
  0xeb   :  { %1072 = vmatprep.mubr.msk.f32.mxu1 %vm287_vm1, %v258_v53  ;;  %v198_v57 = vadd.f32 %v871_v41, %v197_v56 }
  0xec   :  { %v261_v58 = vmax.f32 %v203_v55, 0.0  ;;  %1073 = vmatmul.mubr.msk.f32.gmra.mrb[2].mxu1 %vm287_vm1, %v259_v52 }
  0xed   :  { %v260_v59 = vmax.f32 %v198_v57, 0.0  ;;  %v1040_v60 = vpop.f32.mrb[6].mxu0 }
  0xee   :  { %v213_v61 = vadd.f32 %v1040_v60, %v871_v41  ;;  %v207_v62 = vpop.f32.mrb[7].mxu0 }
  0xef   :  { %1075 = vmatprep.mubr.msk.f32.mxu1 %vm287_vm1, %v260_v59  ;;  %v208_v63 = vadd.f32 %v871_v41, %v207_v62 }
  0xf0   :  { %1076 = vmatmul.mubr.msk.f32.gmra.mrb[4].mxu1 %vm287_vm1, %v261_v58  ;;  %v263_v0 = vmax.f32 %v213_v61, 0.0 }
  0xf1   :  { %v262_v1 = vmax.f32 %v208_v63, 0.0  ;;  %v1043_v2 = vpop.f32.mrb[8].mxu0 }
  0xf2   :  { %v223_v3 = vadd.f32 %v1043_v2, %v871_v41  ;;  %v217_v4 = vpop.f32.mrb[9].mxu0 }
  0xf3   :  { %1078 = vmatprep.mubr.msk.f32.mxu1 %vm287_vm1, %v262_v1  ;;  %v218_v5 = vadd.f32 %v871_v41, %v217_v4 }
  0xf4   :  { %1079 = vmatmul.mubr.msk.f32.gmra.mrb[6].mxu1 %vm287_vm1, %v263_v0  ;;  %v265_v6 = vmax.f32 %v223_v3, 0.0 }
  0xf5   :  { %v264_v7 = vmax.f32 %v218_v5, 0.0  ;;  %v1046_v8 = vpop.f32.mrb[10].mxu0 }
  0xf6   :  { %v233_v9 = vadd.f32 %v1046_v8, %v871_v41  ;;  %v227_v10 = vpop.f32.mrb[11].mxu0 }
  0xf7   :  { %1081 = vmatprep.mubr.msk.f32.mxu1 %vm287_vm1, %v264_v7  ;;  %v228_v11 = vadd.f32 %v871_v41, %v227_v10 }
  0xf8   :  { %1082 = vmatmul.mubr.msk.f32.gmra.mrb[8].mxu1 %vm287_vm1, %v265_v6  ;;  %v267_v12 = vmax.f32 %v233_v9, 0.0 }
  0xf9   :  { %v266_v13 = vmax.f32 %v228_v11, 0.0  ;;  %v1049_v14 = vpop.f32.mrb[12].mxu0  ;;  %v1258_v11 = vmov 0.0|0.0  }
  0xfa   :  { %v243_v15 = vadd.f32 %v1049_v14, %v871_v41  ;;  %v237_v16 = vpop.f32.mrb[13].mxu0  ;;  %1192 = vmatprep.subr.bf16.mxu1 %v1258_v11  ;;  %v1261_v14 = vmov 0  }
  0xfb   :  { %1084 = vmatprep.mubr.msk.f32.mxu1 %vm287_vm1, %v266_v13  ;;  %v238_v17 = vadd.f32 %v871_v41, %v237_v16  ;;  %v718_v13 = vld [vmem:[#allocation2] sm:$0x1]  ;;  %1229 = vset.pattern.permute.xlu0 %v1261_v14 }
  0xfc   :  { %1085 = vmatmul.mubr.msk.f32.gmra.mrb[10].mxu1 %vm287_vm1, %v267_v12  ;;  %v269_v18 = vmax.f32 %v243_v15, 0.0  ;;  %v1260_v12 = vmov 0.0   ;;  %721 = vperm.xlu0 %1229, %v718_v13   ;;  %v905_v15 = vld [vmem:[%s1521_s6] ss:$0 sm:$0xff] }
  0xfd   :  { %v268_v19 = vmax.f32 %v238_v17, 0.0  ;;  %v1052_v20 = vpop.f32.mrb[14].mxu0 }
  0xfe   :  { %v253_v21 = vadd.f32 %v1052_v20, %v871_v41  ;;  %v247_v22 = vpop.f32.mrb[15].mxu0 }
  0xff   :  { %1087 = vmatprep.mubr.msk.f32.mxu1 %vm287_vm1, %v268_v19  ;;  %v248_v23 = vadd.f32 %v871_v41, %v247_v22 }
 0x100   :  { %1088 = vmatmul.mubr.msk.f32.gmra.mrb[12].mxu1 %vm287_vm1, %v269_v18  ;;  %v271_v24 = vmax.f32 %v253_v21, 0.0 }
 0x101   :  { %v270_v25 = vmax.f32 %v248_v23, 0.0 }
 0x103   :  { %1090 = vmatprep.mubr.msk.f32.mxu1 %vm287_vm1, %v270_v25 }
 0x104   :  { %1091 = vmatmul.mubr.msk.f32.gmra.mrb[14].mxu1 %vm287_vm1, %v271_v24 }
 0x105   :  { %1157 = vmatprep.mubr.msk.f32.mxu1 %vm1259_vm2, %v1260_v12 }
 0x17b   :  { %v722_v14 = vpop.permute.xlu0 %721 }
 0x1bb   :  { %v1071_v27 = vpop.f32.mrb[0].mxu1 }
 0x1bc   :  { %v408_v28 = vadd.f32 %v1071_v27, %v888_v26  ;;  %v402_v29 = vpop.f32.mrb[1].mxu1 }
 0x1bd   :  { %v403_v30 = vadd.f32 %v888_v26, %v402_v29 }
 0x1be   :  { %v482_v33 = vmax.f32 %v408_v28, 0.0 }
 0x1bf   :  { %v481_v31 = vmax.f32 %v403_v30, 0.0  ;;  %v1074_v32 = vpop.f32.mrb[2].mxu1 }
 0x1c0   :  { %v418_v34 = vadd.f32 %v1074_v32, %v888_v26  ;;  %v412_v35 = vpop.f32.mrb[3].mxu1 }
 0x1c1   :  { %v413_v36 = vadd.f32 %v888_v26, %v412_v35  ;;  %1101 = vmatprep.mubr.msk.f32.mxu0 %vm62_vm0, %v481_v31 }
 0x1c2   :  { %v484_v37 = vmax.f32 %v418_v34, 0.0  ;;  %1102 = vmatmul.mubr.msk.f32.vlgmr.msra.gmra.mrb[16].mxu0 %vm62_vm0, %v482_v33 }
 0x1c3   :  { %v483_v38 = vmax.f32 %v413_v36, 0.0  ;;  %v1077_v39 = vpop.f32.mrb[4].mxu1 }
 0x1c4   :  { %v428_v40 = vadd.f32 %v1077_v39, %v888_v26  ;;  %v422_v41 = vpop.f32.mrb[5].mxu1 }
 0x1c5   :  { %1104 = vmatprep.mubr.msk.f32.mxu0 %vm62_vm0, %v483_v38  ;;  %v423_v42 = vadd.f32 %v888_v26, %v422_v41 }
 0x1c6   :  { %v486_v43 = vmax.f32 %v428_v40, 0.0  ;;  %1105 = vmatmul.mubr.msk.f32.gmra.mrb[18].mxu0 %vm62_vm0, %v484_v37 }
 0x1c7   :  { %v485_v44 = vmax.f32 %v423_v42, 0.0  ;;  %v1080_v45 = vpop.f32.mrb[6].mxu1 }
 0x1c8   :  { %v438_v46 = vadd.f32 %v1080_v45, %v888_v26  ;;  %v432_v47 = vpop.f32.mrb[7].mxu1 }
 0x1c9   :  { %1107 = vmatprep.mubr.msk.f32.mxu0 %vm62_vm0, %v485_v44  ;;  %v433_v48 = vadd.f32 %v888_v26, %v432_v47 }
 0x1ca   :  { %1108 = vmatmul.mubr.msk.f32.gmra.mrb[20].mxu0 %vm62_vm0, %v486_v43  ;;  %v488_v49 = vmax.f32 %v438_v46, 0.0 }
 0x1cb   :  { %v487_v50 = vmax.f32 %v433_v48, 0.0  ;;  %v1083_v51 = vpop.f32.mrb[8].mxu1 }
 0x1cc   :  { %v448_v52 = vadd.f32 %v1083_v51, %v888_v26  ;;  %v442_v53 = vpop.f32.mrb[9].mxu1 }
 0x1cd   :  { %1110 = vmatprep.mubr.msk.f32.mxu0 %vm62_vm0, %v487_v50  ;;  %v443_v54 = vadd.f32 %v888_v26, %v442_v53 }
 0x1ce   :  { %1111 = vmatmul.mubr.msk.f32.gmra.mrb[22].mxu0 %vm62_vm0, %v488_v49  ;;  %v490_v55 = vmax.f32 %v448_v52, 0.0 }
 0x1cf   :  { %v489_v56 = vmax.f32 %v443_v54, 0.0  ;;  %v1086_v57 = vpop.f32.mrb[10].mxu1 }
 0x1d0   :  { %v458_v58 = vadd.f32 %v1086_v57, %v888_v26  ;;  %v452_v59 = vpop.f32.mrb[11].mxu1 }
 0x1d1   :  { %1113 = vmatprep.mubr.msk.f32.mxu0 %vm62_vm0, %v489_v56  ;;  %v453_v60 = vadd.f32 %v888_v26, %v452_v59 }
 0x1d2   :  { %1114 = vmatmul.mubr.msk.f32.gmra.mrb[24].mxu0 %vm62_vm0, %v490_v55  ;;  %v492_v61 = vmax.f32 %v458_v58, 0.0 }
 0x1d3   :  { %v491_v62 = vmax.f32 %v453_v60, 0.0  ;;  %v1089_v63 = vpop.f32.mrb[12].mxu1 }
 0x1d4   :  { %v468_v0 = vadd.f32 %v1089_v63, %v888_v26  ;;  %v462_v1 = vpop.f32.mrb[13].mxu1 }
 0x1d5   :  { %1116 = vmatprep.mubr.msk.f32.mxu0 %vm62_vm0, %v491_v62  ;;  %v463_v2 = vadd.f32 %v888_v26, %v462_v1 }
 0x1d6   :  { %1117 = vmatmul.mubr.msk.f32.gmra.mrb[26].mxu0 %vm62_vm0, %v492_v61  ;;  %v494_v3 = vmax.f32 %v468_v0, 0.0 }
 0x1d7   :  { %v493_v4 = vmax.f32 %v463_v2, 0.0  ;;  %v1092_v5 = vpop.f32.mrb[14].mxu1 }
 0x1d8   :  { %v478_v6 = vadd.f32 %v1092_v5, %v888_v26  ;;  %v472_v7 = vpop.f32.mrb[15].mxu1 }
 0x1d9   :  { %1119 = vmatprep.mubr.msk.f32.mxu0 %vm62_vm0, %v493_v4  ;;  %v473_v8 = vadd.f32 %v888_v26, %v472_v7 }
 0x1da   :  { %1120 = vmatmul.mubr.msk.f32.gmra.mrb[28].mxu0 %vm62_vm0, %v494_v3  ;;  %v496_v9 = vmax.f32 %v478_v6, 0.0 }
 0x1db   :  { %v495_v10 = vmax.f32 %v473_v8, 0.0 }
 0x1dd   :  { %1122 = vmatprep.mubr.msk.f32.mxu0 %vm62_vm0, %v495_v10  ;;  %v724_v10 = vlaneseq }
 0x1de   :  { %1123 = vmatmul.mubr.msk.f32.gmra.mrb[30].mxu0 %vm62_vm0, %v496_v9  ;;  %v717_v9 = vld [vmem:[%s1522_s7] sm:$0x1]  ;;  %s1234_s7 = scalar_lea.vmem %s864_s30, 16 }
 0x1df   :  { %v725_v12 = vshrl.u32 %v724_v10, 7  ;;  %p1235_p0 = scmp.ne.s32.totalorder %s864_s30, %s1234_s7  ;;  %p1240_p2 = scmp.lt.s32.totalorder %s1238_s10, %s1234_s7 }
 0x1e1   :  { %v726_v13 = vsub.s32 0, %v725_v12  ;;  %p1241_p3 = por %p1240_p2, %p1239_p1 }
 0x1e3   :  { %p1242_p4 = pnand %p1241_p3, %p1235_p0 }
 0x295   :  { %v1103_v16 = vpop.f32.mrb[16].mxu0 }
 0x296   :  { %v628_v17 = vadd.f32 %v1103_v16, %v905_v15  ;;  %v622_v18 = vpop.f32.mrb[17].mxu0 }
 0x297   :  { %v623_v19 = vadd.f32 %v905_v15, %v622_v18 }
 0x298   :  { %v702_v20 = vmax.f32 %v628_v17, 0.0 }
 0x299   :  { %v701_v21 = vmax.f32 %v623_v19, 0.0  ;;  %v1106_v22 = vpop.f32.mrb[18].mxu0 }
 0x29a   :  { %v638_v23 = vadd.f32 %v1106_v22, %v905_v15  ;;  %v632_v24 = vpop.f32.mrb[19].mxu0 }
 0x29b   :  { %v1193_v26 = vpack.c.bf16 %v702_v20, %v701_v21  ;;  %v633_v27 = vadd.f32 %v905_v15, %v632_v24 }
 0x29c   :  { %v704_v28 = vmax.f32 %v638_v23, 0.0 }
 0x29d   :  { %v703_v29 = vmax.f32 %v633_v27, 0.0  ;;  %1195 = vmatpush3.bf16.xpose.msk.msra.mxu1 %vm1472_vm4, %v1193_v26  ;;  %v1109_v30 = vpop.f32.mrb[20].mxu0 }
 0x29e   :  { %v648_v31 = vadd.f32 %v1109_v30, %v905_v15  ;;  %v642_v32 = vpop.f32.mrb[21].mxu0  ;;  %1196 = vmatprep.subr.bf16.mxu1 %v1258_v11 }
 0x29f   :  { %v1197_v33 = vpack.c.bf16 %v704_v28, %v703_v29  ;;  %v643_v34 = vadd.f32 %v905_v15, %v642_v32 }
 0x2a0   :  { %v706_v35 = vmax.f32 %v648_v31, 0.0 }
 0x2a1   :  { %v705_v36 = vmax.f32 %v643_v34, 0.0  ;;  %v1112_v37 = vpop.f32.mrb[22].mxu0 }
 0x2a2   :  { %v658_v38 = vadd.f32 %v1112_v37, %v905_v15  ;;  %v652_v39 = vpop.f32.mrb[23].mxu0 }
 0x2a3   :  { %v1201_v40 = vpack.c.bf16 %v706_v35, %v705_v36  ;;  %v653_v41 = vadd.f32 %v905_v15, %v652_v39 }
 0x2a4   :  { %v708_v42 = vmax.f32 %v658_v38, 0.0 }
 0x2a5   :  { %1199 = vmatpush3.bf16.xpose.msk.msra.mxu1 %vm1472_vm4, %v1197_v33  ;;  %v707_v43 = vmax.f32 %v653_v41, 0.0  ;;  %v1115_v44 = vpop.f32.mrb[24].mxu0 }
 0x2a6   :  { %1200 = vmatprep.subr.bf16.mxu1 %v1258_v11  ;;  %v668_v45 = vadd.f32 %v1115_v44, %v905_v15  ;;  %v662_v46 = vpop.f32.mrb[25].mxu0 }
 0x2a7   :  { %v1205_v47 = vpack.c.bf16 %v708_v42, %v707_v43  ;;  %v663_v48 = vadd.f32 %v905_v15, %v662_v46 }
 0x2a8   :  { %v710_v49 = vmax.f32 %v668_v45, 0.0 }
 0x2a9   :  { %v709_v50 = vmax.f32 %v663_v48, 0.0  ;;  %v1118_v51 = vpop.f32.mrb[26].mxu0 }
 0x2aa   :  { %v678_v52 = vadd.f32 %v1118_v51, %v905_v15  ;;  %v672_v53 = vpop.f32.mrb[27].mxu0 }
 0x2ab   :  { %v1209_v54 = vpack.c.bf16 %v710_v49, %v709_v50  ;;  %v673_v55 = vadd.f32 %v905_v15, %v672_v53 }
 0x2ac   :  { %v712_v56 = vmax.f32 %v678_v52, 0.0 }
 0x2ad   :  { %1203 = vmatpush3.bf16.xpose.msk.msra.mxu1 %vm1472_vm4, %v1201_v40  ;;  %v711_v57 = vmax.f32 %v673_v55, 0.0  ;;  %v1121_v58 = vpop.f32.mrb[28].mxu0 }
 0x2ae   :  { %1204 = vmatprep.subr.bf16.mxu1 %v1258_v11  ;;  %v688_v59 = vadd.f32 %v1121_v58, %v905_v15  ;;  %v682_v60 = vpop.f32.mrb[29].mxu0 }
 0x2af   :  { %v1213_v61 = vpack.c.bf16 %v712_v56, %v711_v57  ;;  %v683_v62 = vadd.f32 %v905_v15, %v682_v60 }
 0x2b0   :  { %v714_v63 = vmax.f32 %v688_v59, 0.0 }
 0x2b1   :  { %v713_v0 = vmax.f32 %v683_v62, 0.0  ;;  %v1124_v1 = vpop.f32.mrb[30].mxu0 }
 0x2b2   :  { %v698_v2 = vadd.f32 %v1124_v1, %v905_v15  ;;  %v692_v3 = vpop.f32.mrb[31].mxu0 }
 0x2b3   :  { %v1217_v4 = vpack.c.bf16 %v714_v63, %v713_v0  ;;  %v693_v5 = vadd.f32 %v905_v15, %v692_v3  ;;  %v727_v15 = vrot.slane %v722_v14, %v726_v13 }
 0x2b4   :  { %v716_v6 = vmax.f32 %v698_v2, 0.0 }
 0x2b5   :  { %1207 = vmatpush3.bf16.xpose.msk.msra.mxu1 %vm1472_vm4, %v1205_v47  ;;  %v715_v7 = vmax.f32 %v693_v5, 0.0 }
 0x2b6   :  { %1208 = vmatprep.subr.bf16.mxu1 %v1258_v11 }
 0x2b7   :  { %v1221_v8 = vpack.c.bf16 %v716_v6, %v715_v7 }
 0x2bd   :  { %1211 = vmatpush3.bf16.xpose.msk.msra.mxu1 %vm1472_vm4, %v1209_v54 }
 0x2be   :  { %1212 = vmatprep.subr.bf16.mxu1 %v1258_v11 }
 0x2c5   :  { %1215 = vmatpush3.bf16.xpose.msk.msra.mxu1 %vm1472_vm4, %v1213_v61 }
 0x2c6   :  { %1216 = vmatprep.subr.bf16.mxu1 %v1258_v11 }
 0x2cd   :  { %1219 = vmatpush3.bf16.xpose.msk.msra.mxu1 %vm1472_vm4, %v1217_v4 }
 0x2ce   :  { %1220 = vmatprep.subr.bf16.mxu1 %v1258_v11 }
 0x2d5   :  { %1223 = vmatpush3.bf16.xpose.msk.msra.mxu1 %vm1472_vm4, %v1221_v8 }
 0x2dc   :  { %1158 = vmatmul.mubr.msk.f32.vlgmr.msra.gmra.mrb[16].mxu1 %vm728_vm3, %v717_v9 }
 0x3af   :  { %v846_v16 = vpop.f32.mrb[16].mxu1 }
 0x3b0   :  { %v847_v17 = vadd.f32 %v846_v16, %v727_v15  ;;  %v1159_v18 = vpop.f32.mrb[17].mxu1 }
 0x3b2   :  { %v939_v19 = vmul.f32 -1.442695, %v847_v17 }
 0x3b4   :  { %1230 = vpow2.f32 %v939_v19 }
 0x3be   :  { %v1231_v11 = vpop.eup %1230 }
 0x3bf   :  { %v853_v20 = vadd.f32 1.0, %v1231_v11 }
 0x3c1   :  { %1232 = vrcp.f32 %v853_v20 }
 0x3cb   :  { %v1233_v21 = vpop.eup %1232 }
 0x3cc   :  { %856 = vst [vmem:[#allocation3] sm:$0x1] %v1233_v21 }
 0x3cd   :  { %1245 = shalt.err (!%p1242_p4)
}
 0x3ce   :  { %s1246_s13 = scalar_lea.hbm %s1524_s9, 16 }
 0x3cf   :  { %p1247_p5 = scmp.ne.s32.totalorder %s1524_s9, %s1246_s13  ;;  %p1250_p6 = scmp.lt.u32.totalorder %s1246_s13, %s1524_s9 }
 0x3d1   :  { %p1252_p7 = pnand %p1250_p6, %p1247_p5 }
 0x3d3   :  { %1255 = shalt.err (!%p1252_p7)
}
 0x3d4   :  { %866 = dma.vmem_to_hbm [thread:$0]  %s864_s30, 16, %s1524_s9, [#allocation4]  }
 0x3d5   :  { %1256 = dma.done.wait [#allocation4], 16  }
 0x3d6   :  { %1257 = vsyncadd [#allocation4], 4294967280 }
 0x3d7   :  { %870 = vsyncpa [#allocation4], 1 }

</bundles_post_ra>
